<compile_context>
chip_gen: v7x
topology: tpu7x:2x2x1
jax: 0.10.0
libtpu: 0.0.40
codegen_flags: <defaults>
</compile_context>

<pallas_src>
import jax
import jax.numpy as jnp
from jax import lax
from jax.experimental import pallas as pl
from jax.experimental.pallas import tpu as pltpu


def mlp_kernel(x_ref, w1_ref, b1_ref, w2_ref, b2_ref, o_ref):
    # x_ref : (tm, cin)        bf16  activation tile
    # w1_ref: (ch, cin)        bf16  lane-dense (PyTorch layout), contract last dims
    # b1_ref: (1, ch)          f32
    # w2_ref: (cout_pad, ch)   bf16  cout zero-padded to a multiple of 128
    # b2_ref: (1, cout_pad)    f32
    # o_ref : (tm, cout_pad)   out dtype
    h = lax.dot_general(
        x_ref[...], w1_ref[...],
        dimension_numbers=(((1,), (1,)), ((), ())),
        preferred_element_type=jnp.float32)                 # (tm, ch), f32 accum
    h = jnp.maximum(h + b1_ref[...], 0.0)                   # bias + ReLU in f32
    out = lax.dot_general(
        h.astype(jnp.bfloat16), w2_ref[...],
        dimension_numbers=(((1,), (1,)), ((), ())),
        preferred_element_type=jnp.float32)                 # (tm, cout_pad)
    o_ref[...] = (out + b2_ref[...]).astype(o_ref.dtype)


def _round_up(x, m):
    return pl.cdiv(x, m) * m


def mlp_forward(x, w1, b1, w2, b2, *, block_m=256):
    """relu(x2d @ w1.T + b1) @ w2.T + b2 with PyTorch-layout weights.

    x: any shape (B, ...), flattened to (B, cin) like torch's x.view(B, -1).
    w1: (ch, cin), b1: (ch,), w2: (cout, ch), b2: (cout,).
    """
    B = x.shape[0]
    x2d = x.reshape(B, -1)
    cin = x2d.shape[1]
    ch, cin_w = w1.shape
    cout, ch_w = w2.shape
    assert cin_w == cin and ch_w == ch
    out_dtype = x2d.dtype

    # Batch padding / M tiling (sublane-aligned), lane-dense output padding.
    B_pad = _round_up(max(B, 8), 8)
    tm = min(block_m, B_pad)
    B_pad = _round_up(B_pad, tm)
    num_m = B_pad // tm
    cout_pad = _round_up(cout, 128)

    # Operand preparation: bf16 MXU inputs, f32 biases, zero padding.
    x_p = jnp.zeros((B_pad, cin), jnp.bfloat16).at[:B].set(x2d.astype(jnp.bfloat16))
    w1_b = w1.astype(jnp.bfloat16)                                      # (ch, cin)
    w2_p = jnp.zeros((cout_pad, ch), jnp.bfloat16).at[:cout].set(w2.astype(jnp.bfloat16))
    b1_p = b1.astype(jnp.float32).reshape(1, ch)
    b2_p = jnp.zeros((1, cout_pad), jnp.float32).at[0, :cout].set(b2.astype(jnp.float32))

    cost = pl.CostEstimate(
        flops=2 * B_pad * cin * ch + 2 * B_pad * ch * cout_pad,
        transcendentals=0,
        bytes_accessed=(x_p.size * 2 + w1_b.size * 2 + w2_p.size * 2
                        + b1_p.size * 4 + b2_p.size * 4
                        + B_pad * cout_pad * jnp.dtype(out_dtype).itemsize),
    )

    out = pl.pallas_call(
        mlp_kernel,
        out_shape=jax.ShapeDtypeStruct((B_pad, cout_pad), out_dtype),
        grid=(num_m,),
        in_specs=[
            pl.BlockSpec((tm, cin), lambda i: (i, 0)),        # x tile marches over batch
            pl.BlockSpec((ch, cin), lambda i: (0, 0)),        # W1 resident
            pl.BlockSpec((1, ch), lambda i: (0, 0)),          # b1 resident
            pl.BlockSpec((cout_pad, ch), lambda i: (0, 0)),   # W2 resident
            pl.BlockSpec((1, cout_pad), lambda i: (0, 0)),    # b2 resident
        ],
        out_specs=pl.BlockSpec((tm, cout_pad), lambda i: (i, 0)),
        compiler_params=pltpu.CompilerParams(
            dimension_semantics=("parallel",)),
        cost_estimate=cost,
    )(x_p, w1_b, b1_p, w2_p, b2_p)

    return out[:B, :cout]


def init_mlp_params(key, cin, ch, cout, dtype=jnp.float32):
    """nn.Linear-style init; weights in PyTorch layout (out_features, in_features)."""
    k1, k2, k3, k4 = jax.random.split(key, 4)
    bound1 = 1.0 / jnp.sqrt(cin)
    bound2 = 1.0 / jnp.sqrt(ch)
    w1 = jax.random.uniform(k1, (ch, cin), dtype, minval=-bound1, maxval=bound1)
    b1 = jax.random.uniform(k2, (ch,), dtype, minval=-bound1, maxval=bound1)
    w2 = jax.random.uniform(k3, (cout, ch), dtype, minval=-bound2, maxval=bound2)
    b2 = jax.random.uniform(k4, (cout,), dtype, minval=-bound2, maxval=bound2)
    return w1, b1, w2, b2


if __name__ == "__main__":
    key = jax.random.PRNGKey(0)
    kx, kp = jax.random.split(key)

    # NCHW input like the PyTorch caller: (B, C, H, W)
    B, C, H, W = 2, 4, 16, 16
    x = jax.random.normal(kx, (B, C, H, W), jnp.float32)

    cin = C * H * W   # 1024
    ch = 32
    cout = 8
    w1, b1, w2, b2 = init_mlp_params(kp, cin, ch, cout)

    out = mlp_forward(x, w1, b1, w2, b2)
    out = jax.block_until_ready(out)

    # Pure-f32 reference (same math as the PyTorch module); bf16 MXU operands
    # in the kernel -> loosened tolerance.
    x2d = x.reshape(B, -1)
    ref = jnp.maximum(x2d @ w1.T + b1, 0.0) @ w2.T + b2
    assert out.shape == (B, cout)
    assert jnp.allclose(out, ref, atol=2e-2, rtol=2e-2), float(jnp.max(jnp.abs(out - ref)))

    print("KERNEL_OK")
</pallas_src>

<mosaic_0001>
module attributes {stable_mosaic.version = 11 : i64} {
  func.func @mlp_kernel(%arg0: i32, %arg1: memref<8x1024xbf16, #tpu.memory_space<vmem>>, %arg2: memref<32x1024xbf16, #tpu.memory_space<vmem>>, %arg3: memref<1x32xf32, #tpu.memory_space<vmem>>, %arg4: memref<128x32xbf16, #tpu.memory_space<vmem>>, %arg5: memref<1x128xf32, #tpu.memory_space<vmem>>, %arg6: memref<8x128xf32, #tpu.memory_space<vmem>>) attributes {dimension_semantics = [#tpu.dimension_semantics<parallel>], iteration_bounds = array<i64: 1>, scalar_prefetch = 0 : i64, scratch_operands = 0 : i64, tpu.core_type = #tpu.core_type<tc>, window_params = [{transform_indices = @transform_0, window_bounds = array<i64: 8, 1024>}, {pipeline_mode = #tpu.pipeline_mode<synchronous>, transform_indices = @transform_1, window_bounds = array<i64: 32, 1024>}, {pipeline_mode = #tpu.pipeline_mode<synchronous>, transform_indices = @transform_2, window_bounds = array<i64: 1, 32>}, {pipeline_mode = #tpu.pipeline_mode<synchronous>, transform_indices = @transform_3, window_bounds = array<i64: 128, 32>}, {pipeline_mode = #tpu.pipeline_mode<synchronous>, transform_indices = @transform_4, window_bounds = array<i64: 1, 128>}, {transform_indices = @transform_5, window_bounds = array<i64: 8, 128>}]} {
    %c0 = arith.constant 0 : index
    %c0_0 = arith.constant 0 : index
    %0 = vector.load %arg1[%c0, %c0_0] : memref<8x1024xbf16, #tpu.memory_space<vmem>>, vector<8x1024xbf16>
    %c0_1 = arith.constant 0 : index
    %c0_2 = arith.constant 0 : index
    %1 = vector.load %arg2[%c0_1, %c0_2] : memref<32x1024xbf16, #tpu.memory_space<vmem>>, vector<32x1024xbf16>
    %cst = arith.constant dense<0.000000e+00> : vector<8x32xf32>
    %2 = tpu.matmul %0, %1, %cst {dimension_numbers = #tpu.dot_dimension_numbers<[1], [1], [0], [0], [0, 0, 1, 0], [], []>} : vector<8x1024xbf16>, vector<32x1024xbf16>, vector<8x32xf32> -> vector<8x32xf32>
    %c0_3 = arith.constant 0 : index
    %c0_4 = arith.constant 0 : index
    %3 = vector.load %arg3[%c0_3, %c0_4] : memref<1x32xf32, #tpu.memory_space<vmem>>, vector<1x32xf32>
    %4 = vector.broadcast %3 : vector<1x32xf32> to vector<8x32xf32>
    %5 = arith.addf %2, %4 : vector<8x32xf32>
    %cst_5 = arith.constant 0.000000e+00 : f32
    %6 = vector.broadcast %cst_5 : f32 to vector<8x32xf32>
    %7 = arith.maximumf %5, %6 : vector<8x32xf32>
    %8 = arith.truncf %7 : vector<8x32xf32> to vector<8x32xbf16>
    %c0_6 = arith.constant 0 : index
    %c0_7 = arith.constant 0 : index
    %9 = vector.load %arg4[%c0_6, %c0_7] : memref<128x32xbf16, #tpu.memory_space<vmem>>, vector<128x32xbf16>
    %cst_8 = arith.constant dense<0.000000e+00> : vector<8x128xf32>
    %10 = tpu.matmul %8, %9, %cst_8 {dimension_numbers = #tpu.dot_dimension_numbers<[1], [1], [0], [0], [0, 0, 1, 0], [], []>} : vector<8x32xbf16>, vector<128x32xbf16>, vector<8x128xf32> -> vector<8x128xf32>
    %c0_9 = arith.constant 0 : index
    %c0_10 = arith.constant 0 : index
    %11 = vector.load %arg5[%c0_9, %c0_10] : memref<1x128xf32, #tpu.memory_space<vmem>>, vector<1x128xf32>
    %12 = vector.broadcast %11 : vector<1x128xf32> to vector<8x128xf32>
    %13 = arith.addf %10, %12 : vector<8x128xf32>
    %c0_11 = arith.constant 0 : index
    %c0_12 = arith.constant 0 : index
    %14 = vector.load %arg6[%c0_11, %c0_12] : memref<8x128xf32, #tpu.memory_space<vmem>>, vector<8x128xf32>
    tpu.vector_store %arg6[%c0_11, %c0_12], %13 {strides = array<i32>} : memref<8x128xf32, #tpu.memory_space<vmem>>, vector<8x128xf32>,
    return
  }
  func.func @transform_0(%arg0: i32) -> (i32, i32) {
    %c0_i32 = arith.constant 0 : i32
    %c0_i32_0 = arith.constant 0 : i32
    return %arg0, %c0_i32 : i32, i32
  }
  func.func @transform_1(%arg0: i32) -> (i32, i32) {
    %c0_i32 = arith.constant 0 : i32
    %c0_i32_0 = arith.constant 0 : i32
    %c0_i32_1 = arith.constant 0 : i32
    return %c0_i32, %c0_i32_0 : i32, i32
  }
  func.func @transform_2(%arg0: i32) -> (i32, i32) {
    %c0_i32 = arith.constant 0 : i32
    %c0_i32_0 = arith.constant 0 : i32
    %c0_i32_1 = arith.constant 0 : i32
    return %c0_i32, %c0_i32_0 : i32, i32
  }
  func.func @transform_3(%arg0: i32) -> (i32, i32) {
    %c0_i32 = arith.constant 0 : i32
    %c0_i32_0 = arith.constant 0 : i32
    %c0_i32_1 = arith.constant 0 : i32
    return %c0_i32, %c0_i32_0 : i32, i32
  }
  func.func @transform_4(%arg0: i32) -> (i32, i32) {
    %c0_i32 = arith.constant 0 : i32
    %c0_i32_0 = arith.constant 0 : i32
    %c0_i32_1 = arith.constant 0 : i32
    return %c0_i32, %c0_i32_0 : i32, i32
  }
  func.func @transform_5(%arg0: i32) -> (i32, i32) {
    %c0_i32 = arith.constant 0 : i32
    %c0_i32_0 = arith.constant 0 : i32
    return %arg0, %c0_i32 : i32, i32
  }
}

</mosaic_0001>

<bundles_post_ra>
// kernel: tpu_custom_call.1
= control target key start
LH: loop header
LB: loop body
LE: loop exit
PB: predicated region body
PF: predicated region fallthrough
CT: control target
= control target key end

     0   :  { %10 = vsyncpa [#allocation3], 0  ;;  %s747_s0 = inlined_call_operand.vmem [shape: bf16[8,1024], index: 0, kind: input, shape index: {}]   ;;  %s748_s1 = inlined_call_operand.hbm [shape: bf16[32,1024], index: 1, kind: input, shape index: {}]   ;;  %s749_s2 = inlined_call_operand.vmem [shape: f32[1,32], index: 2, kind: input, shape index: {}]   ;;  %s750_s3 = inlined_call_operand.vmem [shape: bf16[128,32], index: 3, kind: input, shape index: {}]   ;;  %s751_s4 = inlined_call_operand.vmem [shape: f32[1,128], index: 4, kind: input, shape index: {}]   ;;  %s752_s5 = inlined_call_operand.hbm [shape: f32[8,128], index: 5, kind: output, shape index: {}]  }
   0x1   :  { %11 = vsyncpa [#allocation4], 0  ;;  %s627_s18 = smov [#allocation2]   ;;  %s579_s22 = scalar_lea.hbm %s748_s1, 2048 }
   0x2   :  { %s19_s19 = sshll.u32 %s627_s18, 4  ;;  %p580_p0 = scmp.ne.s32.totalorder %s748_s1, %s579_s22  ;;  %s20_s19 = int_to_ptr.vmem [resolvable:$true] %s19_s19 }
   0x3   :  { %p583_p1 = scmp.lt.u32.totalorder %s579_s22, %s748_s1 }
   0x5   :  { %p585_p2 = pnand %p583_p1, %p580_p0 }
   0x7   :  { %588 = shalt.err (!%p585_p2)
}
   0x8   :  { %s589_s27 = scalar_lea.vmem %s20_s19, 2048  ;;  %p594_p4 = scmp.lt.s32.totalorder %s20_s19, %s20_s19 }
   0x9   :  { %p590_p3 = scmp.ne.s32.totalorder %s20_s19, %s589_s27  ;;  %p595_p5 = scmp.lt.s32.totalorder %s589_s27, %s589_s27 }
   0xb   :  { %p596_p6 = por %p595_p5, %p594_p4 }
   0xd   :  { %p597_p7 = pnand %p596_p6, %p590_p3 }
   0xf   :  { %600 = shalt.err (!%p597_p7)
}
  0x10   :  { %s628_s28 = smov 512   ;;  %s629_s29 = smov 32  }
  0x11   :  { %25 = dma.hbm_to_vmem [thread:$0]  %s748_s1, 2048, %s20_s19, [#allocation3], %s628_s28, %s628_s28, %s629_s29  }
  0x12   :  { %623 = dma.done.wait [#allocation3], 2048  }
  0x13   :  { %624 = vsyncadd [#allocation3], 4294965248  ;;  %v630_v0 = vmov 0.0   ;;  %v40_v1 = vld [vmem:[#allocation2] sm:$0xff]  ;;  %v41_v10 = vld [vmem:[#allocation2 + $0x8] sm:$0xff]  ;;  %vm396_vm0 = vcmask 261120  }
  0x14   :  { %524 = vmatprep.subr.bf16.mxu1 %v630_v0  ;;  %v44_v2 = vld [vmem:[#allocation2 + $0x20] sm:$0xff]  ;;  %v45_v11 = vld [vmem:[#allocation2 + $0x28] sm:$0xff]  ;;  %v573_v25 = vld [vmem:[%s750_s3 + $0x10] sm:$0xff]   ;;  %vm631_vm1 = vmmov 0   ;;  %s632_s7 = smov [#allocation5]  }
  0x15   :  { %v48_v3 = vld [vmem:[#allocation2 + $0x40] sm:$0xff]  ;;  %v490_v4 = vcombine.high %v40_v1, %v44_v2  ;;  %v489_v5 = vcombine.low %v40_v1, %v44_v2  ;;  %v492_v14 = vcombine.high %v41_v10, %v45_v11  ;;  %v572_v16 = vld [vmem:[%s750_s3 + $0x8] sm:$0xff]   ;;  %v491_v22 = vcombine.low %v41_v10, %v45_v11  ;;  %v42_v26 = vld [vmem:[#allocation2 + $0x10] sm:$0xff]  ;;  %540 = vmatprep.mubr.msk.bf16.mxu1 %vm631_vm1, %v630_v0  ;;  %s471_s8 = sshll.u32 %s632_s7, 4  ;;  %s472_s8 = int_to_ptr.vmem [resolvable:$true] %s471_s8 }
  0x16   :  { %v52_v6 = vld [vmem:[#allocation2 + $0x60] sm:$0xff]  ;;  %v49_v17 = vld [vmem:[#allocation2 + $0x48] sm:$0xff]  ;;  %v404_v21 = vsel %vm396_vm0, %v572_v16, 0  ;;  %v46_v27 = vld [vmem:[#allocation2 + $0x30] sm:$0xff]  ;;  %v407_v28 = vsel %vm396_vm0, %v573_v25, 0  ;;  %p606_p9 = scmp.lt.s32.totalorder %s472_s8, %s472_s8 }
  0x17   :  { %v36_v7 = vld [vmem:[%s747_s0] sm:$0xff]  ;;  %v498_v8 = vcombine.high %v48_v3, %v52_v6  ;;  %171 = vmatprep.subr.bf16.mxu0 %v490_v4  ;;  %v497_v13 = vcombine.low %v48_v3, %v52_v6  ;;  %v37_v18 = vld [vmem:[%s747_s0 + $0x8] sm:$0xff]  ;;  %v494_v30 = vcombine.high %v42_v26, %v46_v27  ;;  %v574_v31 = vld [vmem:[%s750_s3 + $0x18] sm:$0xff]   ;;  %v493_v37 = vcombine.low %v42_v26, %v46_v27 }
  0x18   :  { %v482_v9 = vcombine.high %v36_v7, %v36_v7  ;;  %172 = vmatpush1.bf16.xpose.msra.mxu0 %v489_v5  ;;  %v571_v12 = vld [vmem:[%s750_s3] sm:$0xff]   ;;  %v53_v19 = vld [vmem:[#allocation2 + $0x68] sm:$0xff]  ;;  %v481_v20 = vcombine.low %v36_v7, %v36_v7  ;;  %v484_v23 = vcombine.high %v37_v18, %v37_v18  ;;  %v38_v32 = vld [vmem:[%s747_s0 + $0x10] sm:$0xff]  ;;  %v483_v35 = vcombine.low %v37_v18, %v37_v18 }
  0x19   :  { %173 = vmatprep.subr.bf16.mxu0 %v498_v8  ;;  %v401_v15 = vsel %vm396_vm0, %v571_v12, 0  ;;  %v500_v24 = vcombine.high %v49_v17, %v53_v19  ;;  %v499_v29 = vcombine.low %v49_v17, %v53_v19  ;;  %v50_v33 = vld [vmem:[#allocation2 + $0x50] sm:$0xff]  ;;  %v410_v36 = vsel %vm396_vm0, %v574_v31, 0  ;;  %v575_v40 = vld [vmem:[%s750_s3 + $0x20] sm:$0xff]   ;;  %v43_v41 = vld [vmem:[#allocation2 + $0x18] sm:$0xff] }
  0x1a   :  { %203 = vmatprep.mubr.bf16.mxu0 %v482_v9  ;;  %525 = vmatpush3.bf16.xpose.msra.mxu1 %v401_v15  ;;  %v54_v34 = vld [vmem:[#allocation2 + $0x70] sm:$0xff]  ;;  %v486_v38 = vcombine.high %v38_v32, %v38_v32  ;;  %v47_v42 = vld [vmem:[#allocation2 + $0x38] sm:$0xff]  ;;  %v413_v43 = vsel %vm396_vm0, %v575_v40, 0  ;;  %v576_v46 = vld [vmem:[%s750_s3 + $0x28] sm:$0xff]   ;;  %v485_v50 = vcombine.low %v38_v32, %v38_v32 }
  0x1b   :  { %526 = vmatprep.subr.bf16.mxu1 %v630_v0  ;;  %v502_v39 = vcombine.high %v50_v33, %v54_v34  ;;  %v501_v44 = vcombine.low %v50_v33, %v54_v34  ;;  %v496_v45 = vcombine.high %v43_v41, %v47_v42  ;;  %v39_v47 = vld [vmem:[%s747_s0 + $0x18] sm:$0xff]  ;;  %v416_v51 = vsel %vm396_vm0, %v576_v46, 0  ;;  %v577_v55 = vld [vmem:[%s750_s3 + $0x30] sm:$0xff]   ;;  %v480_v61 = vld [vmem:[%s749_s2] ss:$0 sm:$0xff]  ;;  %s601_s2 = scalar_lea.vmem %s472_s8, 128 }
  0x1c   :  { %v51_v48 = vld [vmem:[#allocation2 + $0x58] sm:$0xff]  ;;  %v495_v52 = vcombine.low %v43_v41, %v47_v42  ;;  %v488_v53 = vcombine.high %v39_v47, %v39_v47  ;;  %v419_v56 = vsel %vm396_vm0, %v577_v55, 0  ;;  %v487_v58 = vcombine.low %v39_v47, %v39_v47  ;;  %v505_v6 = vld [vmem:[%s751_s4] ss:$0 sm:$0xff]  ;;  %p602_p8 = scmp.ne.s32.totalorder %s472_s8, %s601_s2  ;;  %p607_p10 = scmp.lt.s32.totalorder %s601_s2, %s601_s2 }
  0x1d   :  { %v55_v49 = vld [vmem:[#allocation2 + $0x78] sm:$0xff] }
  0x1e   :  { %v504_v54 = vcombine.high %v51_v48, %v55_v49  ;;  %v503_v57 = vcombine.low %v51_v48, %v55_v49  ;;  %v578_v59 = vld [vmem:[%s750_s3 + $0x38] sm:$0xff]   ;;  %p608_p11 = por %p607_p10, %p606_p9 }
  0x1f   :  { %v422_v60 = vsel %vm396_vm0, %v578_v59, 0 }
  0x20   :  { %174 = vmatpush1.bf16.xpose.msra.mxu0 %v497_v13  ;;  %p609_p12 = pnand %p608_p11, %p602_p8 }
  0x21   :  { %211 = vmatprep.subr.bf16.mxu0 %v492_v14 }
  0x22   :  { %527 = vmatpush3.bf16.xpose.msra.mxu1 %v404_v21 }
  0x23   :  { %528 = vmatprep.subr.bf16.mxu1 %v630_v0 }
  0x27   :  { %204 = vmatmul.mubr.bf16.vlgmr.msra.gmra.mrb[0].mxu0 %v481_v20 }
  0x28   :  { %212 = vmatpush1.bf16.xpose.msra.mxu0 %v491_v22  ;;  %243 = vmatprep.mubr.bf16.mxu0 %v484_v23 }
  0x29   :  { %213 = vmatprep.subr.bf16.mxu0 %v500_v24 }
  0x2a   :  { %529 = vmatpush3.bf16.xpose.msra.mxu1 %v407_v28 }
  0x2b   :  { %530 = vmatprep.subr.bf16.mxu1 %v630_v0 }
  0x30   :  { %214 = vmatpush1.bf16.xpose.msra.mxu0 %v499_v29 }
  0x31   :  { %251 = vmatprep.subr.bf16.mxu0 %v494_v30 }
  0x32   :  { %531 = vmatpush3.bf16.xpose.msra.mxu1 %v410_v36 }
  0x33   :  { %532 = vmatprep.subr.bf16.mxu1 %v630_v0 }
  0x37   :  { %244 = vmatmul.mubr.bf16.vlgmr.msra.gmra.mrb[0].mxu0 %v483_v35 }
  0x38   :  { %252 = vmatpush1.bf16.xpose.msra.mxu0 %v493_v37  ;;  %283 = vmatprep.mubr.bf16.mxu0 %v486_v38 }
  0x39   :  { %253 = vmatprep.subr.bf16.mxu0 %v502_v39 }
  0x3a   :  { %533 = vmatpush3.bf16.xpose.msra.mxu1 %v413_v43 }
  0x3b   :  { %534 = vmatprep.subr.bf16.mxu1 %v630_v0 }
  0x40   :  { %254 = vmatpush1.bf16.xpose.msra.mxu0 %v501_v44 }
  0x41   :  { %291 = vmatprep.subr.bf16.mxu0 %v496_v45 }
  0x42   :  { %535 = vmatpush3.bf16.xpose.msra.mxu1 %v416_v51 }
  0x43   :  { %536 = vmatprep.subr.bf16.mxu1 %v630_v0 }
  0x47   :  { %284 = vmatmul.mubr.bf16.vlgmr.msra.gmra.mrb[0].mxu0 %v485_v50 }
  0x48   :  { %292 = vmatpush1.bf16.xpose.msra.mxu0 %v495_v52  ;;  %323 = vmatprep.mubr.bf16.mxu0 %v488_v53 }
  0x49   :  { %293 = vmatprep.subr.bf16.mxu0 %v504_v54 }
  0x4a   :  { %537 = vmatpush3.bf16.xpose.msra.mxu1 %v419_v56 }
  0x4b   :  { %538 = vmatprep.subr.bf16.mxu1 %v630_v0 }
  0x50   :  { %294 = vmatpush1.bf16.xpose.msra.mxu0 %v503_v57 }
  0x52   :  { %539 = vmatpush3.bf16.xpose.msra.mxu1 %v422_v60 }
  0x57   :  { %324 = vmatmul.mubr.bf16.vlgmr.msra.gmra.mrb[0].mxu0 %v487_v58 }
 0x12a   :  { %v325_v62 = vpop.f32.mrb[0].mxu0 }
 0x12b   :  { %v544_v63 = vadd.f32 %v480_v61, %v325_v62  ;;  %v327_v1 = vpop.f32.mrb[1].mxu0 }
 0x12c   :  { %v328_v2 = vpop.f32.mrb[2].mxu0 }
 0x12d   :  { %v331_v3 = vmax.f32 %v544_v63, 0.0  ;;  %v329_v4 = vpop.f32.mrb[3].mxu0 }
 0x12f   :  { %v332_v5 = vpack.c.bf16 %v331_v3, %v331_v3 }
 0x131   :  { %541 = vmatmul.mubr.msk.bf16.vlgmr.msra.gmra.mrb[0].mxu1 %vm396_vm0, %v332_v5 }
 0x204   :  { %v458_v0 = vpop.f32.mrb[0].mxu1 }
 0x205   :  { %v459_v7 = vadd.f32 %v505_v6, %v458_v0  ;;  %v542_v8 = vpop.f32.mrb[1].mxu1 }
 0x206   :  { %v461_v9 = vpop.f32.mrb[2].mxu1 }
 0x207   :  { %464 = vst [vmem:[#allocation5] sm:$0xff] %v459_v7  ;;  %v543_v10 = vpop.f32.mrb[3].mxu1 }
 0x208   :  { %612 = shalt.err (!%p609_p12)
}
 0x209   :  { %s613_s4 = scalar_lea.hbm %s752_s5, 128 }
 0x20a   :  { %p614_p13 = scmp.ne.s32.totalorder %s752_s5, %s613_s4  ;;  %p617_p0 = scmp.lt.u32.totalorder %s613_s4, %s752_s5 }
 0x20c   :  { %p619_p1 = pnand %p617_p0, %p614_p13 }
 0x20e   :  { %622 = shalt.err (!%p619_p1)
}
 0x20f   :  { %474 = dma.vmem_to_hbm [thread:$0]  %s472_s8, 128, %s752_s5, [#allocation4]  }
 0x210   :  { %625 = dma.done.wait [#allocation4], 128  }
 0x211   :  { %626 = vsyncadd [#allocation4], 4294967168 }
 0x212   :  { %478 = vsyncpa [#allocation3], 1 }
 0x213   :  { %479 = vsyncpa [#allocation4], 1 }

</bundles_post_ra>
